<compile_context>
chip_gen: v5e
topology: v5e:2x2
jax: 0.10.0
libtpu: 0.0.40
codegen_flags: <defaults>
</compile_context>

<pallas_src>
import functools

import jax
import jax.numpy as jnp
from jax.experimental import pallas as pl
from jax.experimental.pallas import tpu as pltpu

NEG_SLOPE = 0.01      # PyTorch nn.LeakyReLU default
_MASK_NEG = -1e30     # finite "minus infinity" for padded atom lanes


def _round_up(x, m):
    return ((x + m - 1) // m) * m


def _leaky_relu(h):
    # max(h, a*h) == LeakyReLU(h) for 0 < a < 1 (1 VPU op vs cmp+select).
    return jnp.maximum(h, NEG_SLOPE * h)


def _choose_tile(batch):
    """Pick (tile_b, b_pad).

    Goals: minimize zero-row padding (compute-bound kernel), keep >= 2 grid
    steps whenever the batch allows so the 'parallel' axis shards across
    v7x's two TensorCores, and use large tiles at large batch to amortize the
    ~0.35us per-grid-step overhead.
    """
    b8 = _round_up(max(batch, 1), 8)
    if batch >= 512:
        # >= 1024: allow 512-row tiles (still >= 2 grid steps);
        # [512, 1024): cap at 256 so grid >= 2 (both v7x TCs busy).
        candidates = (512, 256, 128) if batch >= 1024 else (256, 128)
        best_tile, best_pad = None, None
        for cand in candidates:               # descending: prefer larger on ties
            pad = _round_up(batch, cand) - batch
            if best_pad is None or pad < best_pad:
                best_tile, best_pad = cand, pad
        tile_b = best_tile
    else:
        # Split into (up to) two tiles; degenerates to one tile for tiny batch.
        half = _round_up(-(-b8 // 2), 8)
        tile_b = half if half < b8 else b8
    return tile_b, _round_up(batch, tile_b)


def _network_kernel(x_ref,
                    w1_ref, b1_ref,
                    w2_ref, b2_ref,
                    w3_ref, b3_ref,
                    w4_ref, b4_ref,
                    w5_ref, b5_ref,
                    w6_ref, b6_ref,
                    support_ref,
                    out_ref,
                    *, n_atoms: int, mode: str):
    # bf16 MXU inputs, f32 accumulation; bias-add / LeakyReLU in f32, re-cast
    # to bf16 before the next matmul.
    def layer(h_bf16, w_ref, b_ref):
        y = jnp.dot(h_bf16, w_ref[...], preferred_element_type=jnp.float32)
        return _leaky_relu(y + b_ref[...]).astype(jnp.bfloat16)

    h = x_ref[...]                      # already bf16 (cast in the wrapper)
    h = layer(h, w1_ref, b1_ref)
    h = layer(h, w2_ref, b2_ref)
    h = layer(h, w3_ref, b3_ref)
    h = layer(h, w4_ref, b4_ref)
    h = layer(h, w5_ref, b5_ref)

    # Final Linear -> logits over the padded atom lanes (f32).
    logits = jnp.dot(h, w6_ref[...], preferred_element_type=jnp.float32) + b6_ref[...]

    # Mask lane padding beyond n_atoms (finite large negative: no inf math).
    b, n_pad = logits.shape
    col = jax.lax.broadcasted_iota(jnp.int32, (b, n_pad), 1)
    valid = col < n_atoms
    logits = jnp.where(valid, logits, _MASK_NEG)

    # Numerically-stable softmax / log_softmax over the last (lane) axis.
    m = jnp.max(logits, axis=-1, keepdims=True)
    shifted = logits - m
    e = jnp.where(valid, jnp.exp(shifted), 0.0)
    denom = jnp.sum(e, axis=-1, keepdims=True)

    if mode == "log":
        result = shifted - jnp.log(denom)
    elif mode == "ev":
        # Fused expected value: probs @ support (support is zero-padded past
        # n_atoms, and e is already zero there). Broadcast across lanes so the
        # store stays lane-dense; the wrapper reads lane 0.
        probs = e * pl.reciprocal(denom, approx=True)
        ev = jnp.sum(probs * support_ref[...], axis=-1, keepdims=True)
        result = jnp.broadcast_to(ev, (b, n_pad))
    else:  # "probs"
        result = e * pl.reciprocal(denom, approx=True)

    # Lane-dense store of the full padded slab (wrapper slices off padding).
    out_ref[...] = result.astype(out_ref.dtype)


class PallasNetwork:
    """JAX/Pallas port of the PyTorch `Network` module."""

    def __init__(self, input_size, v_min, v_max, n_atoms=51, hidden_size=512,
                 key=jax.random.PRNGKey(0)):
        self.input_size = input_size
        self.n_atoms = n_atoms
        self.hidden_size = hidden_size
        self.support = jnp.linspace(v_min, v_max, n_atoms).astype(jnp.float32)

        # Lane-pad the final layer width so the last matmul output / the
        # kernel store is a multiple of 128 lanes; padding is masked out.
        self.n_atoms_pad = _round_up(max(n_atoms, 128), 128)
        self.support_pad = jnp.pad(
            self.support, (0, self.n_atoms_pad - n_atoms)).reshape(1, -1)

        dims = [input_size] + [hidden_size] * 5 + [n_atoms]
        self.params = []
        for i in range(6):
            fan_in, fan_out = dims[i], dims[i + 1]
            key, kw, kb = jax.random.split(key, 3)
            bound = 1.0 / jnp.sqrt(jnp.float32(fan_in))
            w = jax.random.uniform(kw, (fan_in, fan_out), jnp.float32, -bound, bound)
            b = jax.random.uniform(kb, (1, fan_out), jnp.float32, -bound, bound)
            if i == 5:  # pad last layer to n_atoms_pad columns with zeros
                w = jnp.pad(w, ((0, 0), (0, self.n_atoms_pad - fan_out)))
                b = jnp.pad(b, ((0, 0), (0, self.n_atoms_pad - fan_out)))
            # Weights in bf16 (half the HBM->VMEM bytes, native MXU input);
            # biases stay f32 (tiny, added after the f32 accumulation).
            self.params.append((w.astype(jnp.bfloat16), b))

    # ------------------------------------------------------------------ #

    def _forward(self, x, mode):
        batch = x.shape[0]
        tile_b, b_pad = _choose_tile(batch)

        # bf16 end-to-end on the input DMA path.
        x_p = x.astype(jnp.bfloat16)
        if b_pad != batch:
            x_p = jnp.pad(x_p, ((0, b_pad - batch), (0, 0)))

        flat_params = [p for wb in self.params for p in wb]
        resident = flat_params + [self.support_pad]
        kernel = functools.partial(_network_kernel, n_atoms=self.n_atoms, mode=mode)

        # Cost estimate: 6 matmuls + softmax exps; bytes = params + x + out.
        dims = [self.input_size] + [self.hidden_size] * 5 + [self.n_atoms_pad]
        flops = 2 * b_pad * sum(dims[i] * dims[i + 1] for i in range(6))
        bytes_params = sum(int(p.size) * p.dtype.itemsize for p in resident)
        bytes_acc = bytes_params + int(x_p.size) * 2 + b_pad * self.n_atoms_pad * 4
        cost = pl.CostEstimate(flops=flops,
                               transcendentals=b_pad * self.n_atoms_pad,
                               bytes_accessed=bytes_acc)

        # Explicit VMEM budget: resident params (x2 for safety even when
        # single-buffered), double-buffered x/out tiles, activation headroom.
        io_bytes = 2 * (tile_b * self.input_size * 2 + tile_b * self.n_atoms_pad * 4)
        act_bytes = 6 * tile_b * max(self.hidden_size, self.n_atoms_pad) * 4
        vmem_limit = int(min(
            100 << 20,
            max(2 * bytes_params + io_bytes + act_bytes + (4 << 20), 16 << 20)))

        grid = (b_pad // tile_b,)
        n_atoms_pad = self.n_atoms_pad
        input_size = self.input_size

        def build(single_buffer_params):
            def resident_spec(arr):
                # Constant index_map: parameter block is identical for every
                # grid step, so it stays VMEM-resident across batch tiles.
                nd = arr.ndim
                idx = lambda i, _nd=nd: (0,) * _nd
                if single_buffer_params:
                    return pl.BlockSpec(arr.shape, idx,
                                        pipeline_mode=pl.Buffered(1))
                return pl.BlockSpec(arr.shape, idx)

            in_specs = [pl.BlockSpec((tile_b, input_size), lambda i: (i, 0))]
            in_specs += [resident_spec(p) for p in resident]
            out_spec = pl.BlockSpec((tile_b, n_atoms_pad), lambda i: (i, 0))

            return pl.pallas_call(
                kernel,
                out_shape=jax.ShapeDtypeStruct((b_pad, n_atoms_pad), jnp.float32),
                grid=grid,
                in_specs=in_specs,
                out_specs=out_spec,
                compiler_params=pltpu.CompilerParams(
                    dimension_semantics=("parallel",),
                    vmem_limit_bytes=vmem_limit),
                cost_estimate=cost,
            )

        try:
            # Single-buffer the constant-index resident params.
            out = build(True)(x_p, *resident)
        except Exception:
            # Fallback if this JAX/Mosaic build rejects pipeline_mode here.
            out = build(False)(x_p, *resident)
        return out, batch

    # ------------------------------------------------------------------ #

    def __call__(self, x, log=False):
        out, batch = self._forward(x, "log" if log else "probs")
        # Wrapper-side slice: drop batch padding and the padded atom lanes.
        return out[:batch, :self.n_atoms]

    def expected_value(self, x):
        # Fused in-kernel (probs @ support); avoids the HBM round-trip of the
        # full probability slab plus an extra XLA op.
        out, batch = self._forward(x, "ev")
        return out[:batch, 0]


def _reference_forward(net: PallasNetwork, x, log=False):
    """Pure-JAX reference with matching mixed precision (bf16 in, f32 acc)."""
    h = x.astype(jnp.bfloat16)
    for i, (w, b) in enumerate(net.params):
        y = jnp.dot(h, w, preferred_element_type=jnp.float32) + b
        if i < 5:
            h = _leaky_relu(y).astype(jnp.bfloat16)
        else:
            h = y
    logits = h[:, :net.n_atoms]
    return (jax.nn.log_softmax(logits, axis=-1) if log
            else jax.nn.softmax(logits, axis=-1))


if __name__ == "__main__":
    # Small, module-consistent shapes: batch=8, input_size=32, hidden=128, 51 atoms.
    batch, input_size, hidden, n_atoms = 8, 32, 128, 51
    v_min, v_max = -10.0, 10.0

    key = jax.random.PRNGKey(0)
    k_x, k_x2, k_params = jax.random.split(key, 3)
    x = jax.random.normal(k_x, (batch, input_size), jnp.float32)

    net = PallasNetwork(input_size, v_min, v_max, n_atoms=n_atoms,
                        hidden_size=hidden, key=k_params)

    probs = net(x, log=False)
    log_probs = net(x, log=True)
    ev = net.expected_value(x)
    jax.block_until_ready((probs, log_probs, ev))

    # Correctness vs. the mixed-precision pure-JAX reference.
    ref_p = _reference_forward(net, x, log=False)
    ref_lp = _reference_forward(net, x, log=True)
    assert jnp.allclose(probs, ref_p, atol=3e-3, rtol=3e-3), "softmax mismatch"
    assert jnp.allclose(log_probs, ref_lp, atol=2e-2, rtol=2e-2), "log_softmax mismatch"
    assert jnp.allclose(jnp.sum(probs, axis=-1), 1.0, atol=3e-3), "probs don't sum to 1"
    # Fused expected value consistent with (probs * support).sum(-1).
    ev_from_probs = (probs * net.support).sum(axis=-1)
    assert jnp.allclose(ev, ev_from_probs, atol=2e-3, rtol=2e-3), "expected_value mismatch"

    # Multi-tile / padded-batch path: batch=24 -> tile_b=16, grid=(2,), 8 pad rows.
    x2 = jax.random.normal(k_x2, (24, input_size), jnp.float32)
    probs2 = net(x2, log=False)
    jax.block_until_ready(probs2)
    ref_p2 = _reference_forward(net, x2, log=False)
    assert jnp.allclose(probs2, ref_p2, atol=3e-3, rtol=3e-3), "multi-tile mismatch"

    print("KERNEL_OK")
</pallas_src>

<mosaic_0001>
module attributes {stable_mosaic.version = 11 : i64} {
  func.func @_network_kernel(%arg0: i32, %arg1: memref<8x32xbf16, #tpu.memory_space<vmem>>, %arg2: memref<32x128xbf16, #tpu.memory_space<vmem>>, %arg3: memref<1x128xf32, #tpu.memory_space<vmem>>, %arg4: memref<128x128xbf16, #tpu.memory_space<vmem>>, %arg5: memref<1x128xf32, #tpu.memory_space<vmem>>, %arg6: memref<128x128xbf16, #tpu.memory_space<vmem>>, %arg7: memref<1x128xf32, #tpu.memory_space<vmem>>, %arg8: memref<128x128xbf16, #tpu.memory_space<vmem>>, %arg9: memref<1x128xf32, #tpu.memory_space<vmem>>, %arg10: memref<128x128xbf16, #tpu.memory_space<vmem>>, %arg11: memref<1x128xf32, #tpu.memory_space<vmem>>, %arg12: memref<128x128xbf16, #tpu.memory_space<vmem>>, %arg13: memref<1x128xf32, #tpu.memory_space<vmem>>, %arg14: memref<1x128xf32, #tpu.memory_space<vmem>>, %arg15: memref<8x128xf32, #tpu.memory_space<vmem>>) attributes {dimension_semantics = [#tpu.dimension_semantics<parallel>], iteration_bounds = array<i64: 1>, scalar_prefetch = 0 : i64, scratch_operands = 0 : i64, tpu.core_type = #tpu.core_type<tc>, window_params = [{transform_indices = @transform_0, window_bounds = array<i64: 8, 32>}, {pipeline_mode = #tpu.pipeline_mode<synchronous>, transform_indices = @transform_1, window_bounds = array<i64: 32, 128>}, {pipeline_mode = #tpu.pipeline_mode<synchronous>, transform_indices = @transform_2, window_bounds = array<i64: 1, 128>}, {pipeline_mode = #tpu.pipeline_mode<synchronous>, transform_indices = @transform_3, window_bounds = array<i64: 128, 128>}, {pipeline_mode = #tpu.pipeline_mode<synchronous>, transform_indices = @transform_4, window_bounds = array<i64: 1, 128>}, {pipeline_mode = #tpu.pipeline_mode<synchronous>, transform_indices = @transform_5, window_bounds = array<i64: 128, 128>}, {pipeline_mode = #tpu.pipeline_mode<synchronous>, transform_indices = @transform_6, window_bounds = array<i64: 1, 128>}, {pipeline_mode = #tpu.pipeline_mode<synchronous>, transform_indices = @transform_7, window_bounds = array<i64: 128, 128>}, {pipeline_mode = #tpu.pipeline_mode<synchronous>, transform_indices = @transform_8, window_bounds = array<i64: 1, 128>}, {pipeline_mode = #tpu.pipeline_mode<synchronous>, transform_indices = @transform_9, window_bounds = array<i64: 128, 128>}, {pipeline_mode = #tpu.pipeline_mode<synchronous>, transform_indices = @transform_10, window_bounds = array<i64: 1, 128>}, {pipeline_mode = #tpu.pipeline_mode<synchronous>, transform_indices = @transform_11, window_bounds = array<i64: 128, 128>}, {pipeline_mode = #tpu.pipeline_mode<synchronous>, transform_indices = @transform_12, window_bounds = array<i64: 1, 128>}, {pipeline_mode = #tpu.pipeline_mode<synchronous>, transform_indices = @transform_13, window_bounds = array<i64: 1, 128>}, {transform_indices = @transform_14, window_bounds = array<i64: 8, 128>}]} {
    %c0 = arith.constant 0 : index
    %c0_0 = arith.constant 0 : index
    %0 = vector.load %arg1[%c0, %c0_0] : memref<8x32xbf16, #tpu.memory_space<vmem>>, vector<8x32xbf16>
    %c0_1 = arith.constant 0 : index
    %c0_2 = arith.constant 0 : index
    %1 = vector.load %arg2[%c0_1, %c0_2] : memref<32x128xbf16, #tpu.memory_space<vmem>>, vector<32x128xbf16>
    %cst = arith.constant dense<0.000000e+00> : vector<8x128xf32>
    %2 = tpu.matmul %0, %1, %cst {dimension_numbers = #tpu.dot_dimension_numbers<[1], [0], [0], [1], [0, 0, 1, 1], [], []>} : vector<8x32xbf16>, vector<32x128xbf16>, vector<8x128xf32> -> vector<8x128xf32>
    %c0_3 = arith.constant 0 : index
    %c0_4 = arith.constant 0 : index
    %3 = vector.load %arg3[%c0_3, %c0_4] : memref<1x128xf32, #tpu.memory_space<vmem>>, vector<1x128xf32>
    %4 = vector.broadcast %3 : vector<1x128xf32> to vector<8x128xf32>
    %5 = arith.addf %2, %4 : vector<8x128xf32>
    %cst_5 = arith.constant 0.00999999977 : f32
    %6 = vector.broadcast %cst_5 : f32 to vector<8x128xf32>
    %7 = arith.mulf %6, %5 : vector<8x128xf32>
    %8 = arith.maximumf %5, %7 : vector<8x128xf32>
    %9 = arith.truncf %8 : vector<8x128xf32> to vector<8x128xbf16>
    %c0_6 = arith.constant 0 : index
    %c0_7 = arith.constant 0 : index
    %10 = vector.load %arg4[%c0_6, %c0_7] : memref<128x128xbf16, #tpu.memory_space<vmem>>, vector<128x128xbf16>
    %cst_8 = arith.constant dense<0.000000e+00> : vector<8x128xf32>
    %11 = tpu.matmul %9, %10, %cst_8 {dimension_numbers = #tpu.dot_dimension_numbers<[1], [0], [0], [1], [0, 0, 1, 1], [], []>} : vector<8x128xbf16>, vector<128x128xbf16>, vector<8x128xf32> -> vector<8x128xf32>
    %c0_9 = arith.constant 0 : index
    %c0_10 = arith.constant 0 : index
    %12 = vector.load %arg5[%c0_9, %c0_10] : memref<1x128xf32, #tpu.memory_space<vmem>>, vector<1x128xf32>
    %13 = vector.broadcast %12 : vector<1x128xf32> to vector<8x128xf32>
    %14 = arith.addf %11, %13 : vector<8x128xf32>
    %cst_11 = arith.constant 0.00999999977 : f32
    %15 = vector.broadcast %cst_11 : f32 to vector<8x128xf32>
    %16 = arith.mulf %15, %14 : vector<8x128xf32>
    %17 = arith.maximumf %14, %16 : vector<8x128xf32>
    %18 = arith.truncf %17 : vector<8x128xf32> to vector<8x128xbf16>
    %c0_12 = arith.constant 0 : index
    %c0_13 = arith.constant 0 : index
    %19 = vector.load %arg6[%c0_12, %c0_13] : memref<128x128xbf16, #tpu.memory_space<vmem>>, vector<128x128xbf16>
    %cst_14 = arith.constant dense<0.000000e+00> : vector<8x128xf32>
    %20 = tpu.matmul %18, %19, %cst_14 {dimension_numbers = #tpu.dot_dimension_numbers<[1], [0], [0], [1], [0, 0, 1, 1], [], []>} : vector<8x128xbf16>, vector<128x128xbf16>, vector<8x128xf32> -> vector<8x128xf32>
    %c0_15 = arith.constant 0 : index
    %c0_16 = arith.constant 0 : index
    %21 = vector.load %arg7[%c0_15, %c0_16] : memref<1x128xf32, #tpu.memory_space<vmem>>, vector<1x128xf32>
    %22 = vector.broadcast %21 : vector<1x128xf32> to vector<8x128xf32>
    %23 = arith.addf %20, %22 : vector<8x128xf32>
    %cst_17 = arith.constant 0.00999999977 : f32
    %24 = vector.broadcast %cst_17 : f32 to vector<8x128xf32>
    %25 = arith.mulf %24, %23 : vector<8x128xf32>
    %26 = arith.maximumf %23, %25 : vector<8x128xf32>
    %27 = arith.truncf %26 : vector<8x128xf32> to vector<8x128xbf16>
    %c0_18 = arith.constant 0 : index
    %c0_19 = arith.constant 0 : index
    %28 = vector.load %arg8[%c0_18, %c0_19] : memref<128x128xbf16, #tpu.memory_space<vmem>>, vector<128x128xbf16>
    %cst_20 = arith.constant dense<0.000000e+00> : vector<8x128xf32>
    %29 = tpu.matmul %27, %28, %cst_20 {dimension_numbers = #tpu.dot_dimension_numbers<[1], [0], [0], [1], [0, 0, 1, 1], [], []>} : vector<8x128xbf16>, vector<128x128xbf16>, vector<8x128xf32> -> vector<8x128xf32>
    %c0_21 = arith.constant 0 : index
    %c0_22 = arith.constant 0 : index
    %30 = vector.load %arg9[%c0_21, %c0_22] : memref<1x128xf32, #tpu.memory_space<vmem>>, vector<1x128xf32>
    %31 = vector.broadcast %30 : vector<1x128xf32> to vector<8x128xf32>
    %32 = arith.addf %29, %31 : vector<8x128xf32>
    %cst_23 = arith.constant 0.00999999977 : f32
    %33 = vector.broadcast %cst_23 : f32 to vector<8x128xf32>
    %34 = arith.mulf %33, %32 : vector<8x128xf32>
    %35 = arith.maximumf %32, %34 : vector<8x128xf32>
    %36 = arith.truncf %35 : vector<8x128xf32> to vector<8x128xbf16>
    %c0_24 = arith.constant 0 : index
    %c0_25 = arith.constant 0 : index
    %37 = vector.load %arg10[%c0_24, %c0_25] : memref<128x128xbf16, #tpu.memory_space<vmem>>, vector<128x128xbf16>
    %cst_26 = arith.constant dense<0.000000e+00> : vector<8x128xf32>
    %38 = tpu.matmul %36, %37, %cst_26 {dimension_numbers = #tpu.dot_dimension_numbers<[1], [0], [0], [1], [0, 0, 1, 1], [], []>} : vector<8x128xbf16>, vector<128x128xbf16>, vector<8x128xf32> -> vector<8x128xf32>
    %c0_27 = arith.constant 0 : index
    %c0_28 = arith.constant 0 : index
    %39 = vector.load %arg11[%c0_27, %c0_28] : memref<1x128xf32, #tpu.memory_space<vmem>>, vector<1x128xf32>
    %40 = vector.broadcast %39 : vector<1x128xf32> to vector<8x128xf32>
    %41 = arith.addf %38, %40 : vector<8x128xf32>
    %cst_29 = arith.constant 0.00999999977 : f32
    %42 = vector.broadcast %cst_29 : f32 to vector<8x128xf32>
    %43 = arith.mulf %42, %41 : vector<8x128xf32>
    %44 = arith.maximumf %41, %43 : vector<8x128xf32>
    %45 = arith.truncf %44 : vector<8x128xf32> to vector<8x128xbf16>
    %c0_30 = arith.constant 0 : index
    %c0_31 = arith.constant 0 : index
    %46 = vector.load %arg12[%c0_30, %c0_31] : memref<128x128xbf16, #tpu.memory_space<vmem>>, vector<128x128xbf16>
    %cst_32 = arith.constant dense<0.000000e+00> : vector<8x128xf32>
    %47 = tpu.matmul %45, %46, %cst_32 {dimension_numbers = #tpu.dot_dimension_numbers<[1], [0], [0], [1], [0, 0, 1, 1], [], []>} : vector<8x128xbf16>, vector<128x128xbf16>, vector<8x128xf32> -> vector<8x128xf32>
    %c0_33 = arith.constant 0 : index
    %c0_34 = arith.constant 0 : index
    %48 = vector.load %arg13[%c0_33, %c0_34] : memref<1x128xf32, #tpu.memory_space<vmem>>, vector<1x128xf32>
    %49 = vector.broadcast %48 : vector<1x128xf32> to vector<8x128xf32>
    %50 = arith.addf %47, %49 : vector<8x128xf32>
    %51 = tpu.iota {dimensions = array<i32: 1>} : vector<8x128xi32>
    %c51_i32 = arith.constant 51 : i32
    %52 = vector.broadcast %c51_i32 : i32 to vector<8x128xi32>
    %53 = arith.cmpi slt, %51, %52 : vector<8x128xi32>
    %cst_35 = arith.constant -1.000000e+30 : f32
    %54 = vector.broadcast %cst_35 : f32 to vector<8x128xf32>
    %55 = arith.select %53, %50, %54 : vector<8x128xi1>, vector<8x128xf32>
    %cst_36 = arith.constant dense<0xFF800000> : vector<8xf32>
    %56 = vector.multi_reduction <maximumf>, %55, %cst_36 [1] : vector<8x128xf32> to vector<8xf32>
    %57 = vector.shape_cast %56 : vector<8xf32> to vector<8x1xf32>
    %58 = vector.broadcast %57 : vector<8x1xf32> to vector<8x128xf32>
    %59 = arith.subf %55, %58 : vector<8x128xf32>
    %60 = math.exp %59 : vector<8x128xf32>
    %cst_37 = arith.constant 0.000000e+00 : f32
    %61 = vector.broadcast %cst_37 : f32 to vector<8x128xf32>
    %62 = arith.select %53, %60, %61 : vector<8x128xi1>, vector<8x128xf32>
    %cst_38 = arith.constant dense<0.000000e+00> : vector<8xf32>
    %63 = vector.multi_reduction <add>, %62, %cst_38 [1] : vector<8x128xf32> to vector<8xf32>
    %64 = vector.shape_cast %63 : vector<8xf32> to vector<8x1xf32>
    %65 = tpu.reciprocal %64 {approx = true} : vector<8x1xf32> -> vector<8x1xf32>
    %66 = vector.broadcast %65 : vector<8x1xf32> to vector<8x128xf32>
    %67 = arith.mulf %62, %66 : vector<8x128xf32>
    %c0_39 = arith.constant 0 : index
    %c0_40 = arith.constant 0 : index
    %68 = vector.load %arg15[%c0_39, %c0_40] : memref<8x128xf32, #tpu.memory_space<vmem>>, vector<8x128xf32>
    tpu.vector_store %arg15[%c0_39, %c0_40], %67 {strides = array<i32>} : memref<8x128xf32, #tpu.memory_space<vmem>>, vector<8x128xf32>,
    return
  }
  func.func @transform_0(%arg0: i32) -> (i32, i32) {
    %c0_i32 = arith.constant 0 : i32
    %c0_i32_0 = arith.constant 0 : i32
    return %arg0, %c0_i32 : i32, i32
  }
  func.func @transform_1(%arg0: i32) -> (i32, i32) {
    %c0_i32 = arith.constant 0 : i32
    %c0_i32_0 = arith.constant 0 : i32
    %c0_i32_1 = arith.constant 0 : i32
    return %c0_i32, %c0_i32_0 : i32, i32
  }
  func.func @transform_2(%arg0: i32) -> (i32, i32) {
    %c0_i32 = arith.constant 0 : i32
    %c0_i32_0 = arith.constant 0 : i32
    %c0_i32_1 = arith.constant 0 : i32
    return %c0_i32, %c0_i32_0 : i32, i32
  }
  func.func @transform_3(%arg0: i32) -> (i32, i32) {
    %c0_i32 = arith.constant 0 : i32
    %c0_i32_0 = arith.constant 0 : i32
    %c0_i32_1 = arith.constant 0 : i32
    return %c0_i32, %c0_i32_0 : i32, i32
  }
  func.func @transform_4(%arg0: i32) -> (i32, i32) {
    %c0_i32 = arith.constant 0 : i32
    %c0_i32_0 = arith.constant 0 : i32
    %c0_i32_1 = arith.constant 0 : i32
    return %c0_i32, %c0_i32_0 : i32, i32
  }
  func.func @transform_5(%arg0: i32) -> (i32, i32) {
    %c0_i32 = arith.constant 0 : i32
    %c0_i32_0 = arith.constant 0 : i32
    %c0_i32_1 = arith.constant 0 : i32
    return %c0_i32, %c0_i32_0 : i32, i32
  }
  func.func @transform_6(%arg0: i32) -> (i32, i32) {
    %c0_i32 = arith.constant 0 : i32
    %c0_i32_0 = arith.constant 0 : i32
    %c0_i32_1 = arith.constant 0 : i32
    return %c0_i32, %c0_i32_0 : i32, i32
  }
  func.func @transform_7(%arg0: i32) -> (i32, i32) {
    %c0_i32 = arith.constant 0 : i32
    %c0_i32_0 = arith.constant 0 : i32
    %c0_i32_1 = arith.constant 0 : i32
    return %c0_i32, %c0_i32_0 : i32, i32
  }
  func.func @transform_8(%arg0: i32) -> (i32, i32) {
    %c0_i32 = arith.constant 0 : i32
    %c0_i32_0 = arith.constant 0 : i32
    %c0_i32_1 = arith.constant 0 : i32
    return %c0_i32, %c0_i32_0 : i32, i32
  }
  func.func @transform_9(%arg0: i32) -> (i32, i32) {
    %c0_i32 = arith.constant 0 : i32
    %c0_i32_0 = arith.constant 0 : i32
    %c0_i32_1 = arith.constant 0 : i32
    return %c0_i32, %c0_i32_0 : i32, i32
  }
  func.func @transform_10(%arg0: i32) -> (i32, i32) {
    %c0_i32 = arith.constant 0 : i32
    %c0_i32_0 = arith.constant 0 : i32
    %c0_i32_1 = arith.constant 0 : i32
    return %c0_i32, %c0_i32_0 : i32, i32
  }
  func.func @transform_11(%arg0: i32) -> (i32, i32) {
    %c0_i32 = arith.constant 0 : i32
    %c0_i32_0 = arith.constant 0 : i32
    %c0_i32_1 = arith.constant 0 : i32
    return %c0_i32, %c0_i32_0 : i32, i32
  }
  func.func @transform_12(%arg0: i32) -> (i32, i32) {
    %c0_i32 = arith.constant 0 : i32
    %c0_i32_0 = arith.constant 0 : i32
    %c0_i32_1 = arith.constant 0 : i32
    return %c0_i32, %c0_i32_0 : i32, i32
  }
  func.func @transform_13(%arg0: i32) -> (i32, i32) {
    %c0_i32 = arith.constant 0 : i32
    %c0_i32_0 = arith.constant 0 : i32
    %c0_i32_1 = arith.constant 0 : i32
    return %c0_i32, %c0_i32_0 : i32, i32
  }
  func.func @transform_14(%arg0: i32) -> (i32, i32) {
    %c0_i32 = arith.constant 0 : i32
    %c0_i32_0 = arith.constant 0 : i32
    return %arg0, %c0_i32 : i32, i32
  }
}

module attributes {stable_mosaic.version = 11 : i64} {
  func.func @_network_kernel(%arg0: i32, %arg1: memref<8x32xbf16, #tpu.memory_space<vmem>>, %arg2: memref<32x128xbf16, #tpu.memory_space<vmem>>, %arg3: memref<1x128xf32, #tpu.memory_space<vmem>>, %arg4: memref<128x128xbf16, #tpu.memory_space<vmem>>, %arg5: memref<1x128xf32, #tpu.memory_space<vmem>>, %arg6: memref<128x128xbf16, #tpu.memory_space<vmem>>, %arg7: memref<1x128xf32, #tpu.memory_space<vmem>>, %arg8: memref<128x128xbf16, #tpu.memory_space<vmem>>, %arg9: memref<1x128xf32, #tpu.memory_space<vmem>>, %arg10: memref<128x128xbf16, #tpu.memory_space<vmem>>, %arg11: memref<1x128xf32, #tpu.memory_space<vmem>>, %arg12: memref<128x128xbf16, #tpu.memory_space<vmem>>, %arg13: memref<1x128xf32, #tpu.memory_space<vmem>>, %arg14: memref<1x128xf32, #tpu.memory_space<vmem>>, %arg15: memref<8x128xf32, #tpu.memory_space<vmem>>) attributes {dimension_semantics = [#tpu.dimension_semantics<parallel>], iteration_bounds = array<i64: 1>, scalar_prefetch = 0 : i64, scratch_operands = 0 : i64, tpu.core_type = #tpu.core_type<tc>, window_params = [{transform_indices = @transform_0, window_bounds = array<i64: 8, 32>}, {pipeline_mode = #tpu.pipeline_mode<synchronous>, transform_indices = @transform_1, window_bounds = array<i64: 32, 128>}, {pipeline_mode = #tpu.pipeline_mode<synchronous>, transform_indices = @transform_2, window_bounds = array<i64: 1, 128>}, {pipeline_mode = #tpu.pipeline_mode<synchronous>, transform_indices = @transform_3, window_bounds = array<i64: 128, 128>}, {pipeline_mode = #tpu.pipeline_mode<synchronous>, transform_indices = @transform_4, window_bounds = array<i64: 1, 128>}, {pipeline_mode = #tpu.pipeline_mode<synchronous>, transform_indices = @transform_5, window_bounds = array<i64: 128, 128>}, {pipeline_mode = #tpu.pipeline_mode<synchronous>, transform_indices = @transform_6, window_bounds = array<i64: 1, 128>}, {pipeline_mode = #tpu.pipeline_mode<synchronous>, transform_indices = @transform_7, window_bounds = array<i64: 128, 128>}, {pipeline_mode = #tpu.pipeline_mode<synchronous>, transform_indices = @transform_8, window_bounds = array<i64: 1, 128>}, {pipeline_mode = #tpu.pipeline_mode<synchronous>, transform_indices = @transform_9, window_bounds = array<i64: 128, 128>}, {pipeline_mode = #tpu.pipeline_mode<synchronous>, transform_indices = @transform_10, window_bounds = array<i64: 1, 128>}, {pipeline_mode = #tpu.pipeline_mode<synchronous>, transform_indices = @transform_11, window_bounds = array<i64: 128, 128>}, {pipeline_mode = #tpu.pipeline_mode<synchronous>, transform_indices = @transform_12, window_bounds = array<i64: 1, 128>}, {pipeline_mode = #tpu.pipeline_mode<synchronous>, transform_indices = @transform_13, window_bounds = array<i64: 1, 128>}, {transform_indices = @transform_14, window_bounds = array<i64: 8, 128>}]} {
    %c0 = arith.constant 0 : index
    %c0_0 = arith.constant 0 : index
    %0 = vector.load %arg1[%c0, %c0_0] : memref<8x32xbf16, #tpu.memory_space<vmem>>, vector<8x32xbf16>
    %c0_1 = arith.constant 0 : index
    %c0_2 = arith.constant 0 : index
    %1 = vector.load %arg2[%c0_1, %c0_2] : memref<32x128xbf16, #tpu.memory_space<vmem>>, vector<32x128xbf16>
    %cst = arith.constant dense<0.000000e+00> : vector<8x128xf32>
    %2 = tpu.matmul %0, %1, %cst {dimension_numbers = #tpu.dot_dimension_numbers<[1], [0], [0], [1], [0, 0, 1, 1], [], []>} : vector<8x32xbf16>, vector<32x128xbf16>, vector<8x128xf32> -> vector<8x128xf32>
    %c0_3 = arith.constant 0 : index
    %c0_4 = arith.constant 0 : index
    %3 = vector.load %arg3[%c0_3, %c0_4] : memref<1x128xf32, #tpu.memory_space<vmem>>, vector<1x128xf32>
    %4 = vector.broadcast %3 : vector<1x128xf32> to vector<8x128xf32>
    %5 = arith.addf %2, %4 : vector<8x128xf32>
    %cst_5 = arith.constant 0.00999999977 : f32
    %6 = vector.broadcast %cst_5 : f32 to vector<8x128xf32>
    %7 = arith.mulf %6, %5 : vector<8x128xf32>
    %8 = arith.maximumf %5, %7 : vector<8x128xf32>
    %9 = arith.truncf %8 : vector<8x128xf32> to vector<8x128xbf16>
    %c0_6 = arith.constant 0 : index
    %c0_7 = arith.constant 0 : index
    %10 = vector.load %arg4[%c0_6, %c0_7] : memref<128x128xbf16, #tpu.memory_space<vmem>>, vector<128x128xbf16>
    %cst_8 = arith.constant dense<0.000000e+00> : vector<8x128xf32>
    %11 = tpu.matmul %9, %10, %cst_8 {dimension_numbers = #tpu.dot_dimension_numbers<[1], [0], [0], [1], [0, 0, 1, 1], [], []>} : vector<8x128xbf16>, vector<128x128xbf16>, vector<8x128xf32> -> vector<8x128xf32>
    %c0_9 = arith.constant 0 : index
    %c0_10 = arith.constant 0 : index
    %12 = vector.load %arg5[%c0_9, %c0_10] : memref<1x128xf32, #tpu.memory_space<vmem>>, vector<1x128xf32>
    %13 = vector.broadcast %12 : vector<1x128xf32> to vector<8x128xf32>
    %14 = arith.addf %11, %13 : vector<8x128xf32>
    %cst_11 = arith.constant 0.00999999977 : f32
    %15 = vector.broadcast %cst_11 : f32 to vector<8x128xf32>
    %16 = arith.mulf %15, %14 : vector<8x128xf32>
    %17 = arith.maximumf %14, %16 : vector<8x128xf32>
    %18 = arith.truncf %17 : vector<8x128xf32> to vector<8x128xbf16>
    %c0_12 = arith.constant 0 : index
    %c0_13 = arith.constant 0 : index
    %19 = vector.load %arg6[%c0_12, %c0_13] : memref<128x128xbf16, #tpu.memory_space<vmem>>, vector<128x128xbf16>
    %cst_14 = arith.constant dense<0.000000e+00> : vector<8x128xf32>
    %20 = tpu.matmul %18, %19, %cst_14 {dimension_numbers = #tpu.dot_dimension_numbers<[1], [0], [0], [1], [0, 0, 1, 1], [], []>} : vector<8x128xbf16>, vector<128x128xbf16>, vector<8x128xf32> -> vector<8x128xf32>
    %c0_15 = arith.constant 0 : index
    %c0_16 = arith.constant 0 : index
    %21 = vector.load %arg7[%c0_15, %c0_16] : memref<1x128xf32, #tpu.memory_space<vmem>>, vector<1x128xf32>
    %22 = vector.broadcast %21 : vector<1x128xf32> to vector<8x128xf32>
    %23 = arith.addf %20, %22 : vector<8x128xf32>
    %cst_17 = arith.constant 0.00999999977 : f32
    %24 = vector.broadcast %cst_17 : f32 to vector<8x128xf32>
    %25 = arith.mulf %24, %23 : vector<8x128xf32>
    %26 = arith.maximumf %23, %25 : vector<8x128xf32>
    %27 = arith.truncf %26 : vector<8x128xf32> to vector<8x128xbf16>
    %c0_18 = arith.constant 0 : index
    %c0_19 = arith.constant 0 : index
    %28 = vector.load %arg8[%c0_18, %c0_19] : memref<128x128xbf16, #tpu.memory_space<vmem>>, vector<128x128xbf16>
    %cst_20 = arith.constant dense<0.000000e+00> : vector<8x128xf32>
    %29 = tpu.matmul %27, %28, %cst_20 {dimension_numbers = #tpu.dot_dimension_numbers<[1], [0], [0], [1], [0, 0, 1, 1], [], []>} : vector<8x128xbf16>, vector<128x128xbf16>, vector<8x128xf32> -> vector<8x128xf32>
    %c0_21 = arith.constant 0 : index
    %c0_22 = arith.constant 0 : index
    %30 = vector.load %arg9[%c0_21, %c0_22] : memref<1x128xf32, #tpu.memory_space<vmem>>, vector<1x128xf32>
    %31 = vector.broadcast %30 : vector<1x128xf32> to vector<8x128xf32>
    %32 = arith.addf %29, %31 : vector<8x128xf32>
    %cst_23 = arith.constant 0.00999999977 : f32
    %33 = vector.broadcast %cst_23 : f32 to vector<8x128xf32>
    %34 = arith.mulf %33, %32 : vector<8x128xf32>
    %35 = arith.maximumf %32, %34 : vector<8x128xf32>
    %36 = arith.truncf %35 : vector<8x128xf32> to vector<8x128xbf16>
    %c0_24 = arith.constant 0 : index
    %c0_25 = arith.constant 0 : index
    %37 = vector.load %arg10[%c0_24, %c0_25] : memref<128x128xbf16, #tpu.memory_space<vmem>>, vector<128x128xbf16>
    %cst_26 = arith.constant dense<0.000000e+00> : vector<8x128xf32>
    %38 = tpu.matmul %36, %37, %cst_26 {dimension_numbers = #tpu.dot_dimension_numbers<[1], [0], [0], [1], [0, 0, 1, 1], [], []>} : vector<8x128xbf16>, vector<128x128xbf16>, vector<8x128xf32> -> vector<8x128xf32>
    %c0_27 = arith.constant 0 : index
    %c0_28 = arith.constant 0 : index
    %39 = vector.load %arg11[%c0_27, %c0_28] : memref<1x128xf32, #tpu.memory_space<vmem>>, vector<1x128xf32>
    %40 = vector.broadcast %39 : vector<1x128xf32> to vector<8x128xf32>
    %41 = arith.addf %38, %40 : vector<8x128xf32>
    %cst_29 = arith.constant 0.00999999977 : f32
    %42 = vector.broadcast %cst_29 : f32 to vector<8x128xf32>
    %43 = arith.mulf %42, %41 : vector<8x128xf32>
    %44 = arith.maximumf %41, %43 : vector<8x128xf32>
    %45 = arith.truncf %44 : vector<8x128xf32> to vector<8x128xbf16>
    %c0_30 = arith.constant 0 : index
    %c0_31 = arith.constant 0 : index
    %46 = vector.load %arg12[%c0_30, %c0_31] : memref<128x128xbf16, #tpu.memory_space<vmem>>, vector<128x128xbf16>
    %cst_32 = arith.constant dense<0.000000e+00> : vector<8x128xf32>
    %47 = tpu.matmul %45, %46, %cst_32 {dimension_numbers = #tpu.dot_dimension_numbers<[1], [0], [0], [1], [0, 0, 1, 1], [], []>} : vector<8x128xbf16>, vector<128x128xbf16>, vector<8x128xf32> -> vector<8x128xf32>
    %c0_33 = arith.constant 0 : index
    %c0_34 = arith.constant 0 : index
    %48 = vector.load %arg13[%c0_33, %c0_34] : memref<1x128xf32, #tpu.memory_space<vmem>>, vector<1x128xf32>
    %49 = vector.broadcast %48 : vector<1x128xf32> to vector<8x128xf32>
    %50 = arith.addf %47, %49 : vector<8x128xf32>
    %51 = tpu.iota {dimensions = array<i32: 1>} : vector<8x128xi32>
    %c51_i32 = arith.constant 51 : i32
    %52 = vector.broadcast %c51_i32 : i32 to vector<8x128xi32>
    %53 = arith.cmpi slt, %51, %52 : vector<8x128xi32>
    %cst_35 = arith.constant -1.000000e+30 : f32
    %54 = vector.broadcast %cst_35 : f32 to vector<8x128xf32>
    %55 = arith.select %53, %50, %54 : vector<8x128xi1>, vector<8x128xf32>
    %cst_36 = arith.constant dense<0xFF800000> : vector<8xf32>
    %56 = vector.multi_reduction <maximumf>, %55, %cst_36 [1] : vector<8x128xf32> to vector<8xf32>
    %57 = vector.shape_cast %56 : vector<8xf32> to vector<8x1xf32>
    %58 = vector.broadcast %57 : vector<8x1xf32> to vector<8x128xf32>
    %59 = arith.subf %55, %58 : vector<8x128xf32>
    %60 = math.exp %59 : vector<8x128xf32>
    %cst_37 = arith.constant 0.000000e+00 : f32
    %61 = vector.broadcast %cst_37 : f32 to vector<8x128xf32>
    %62 = arith.select %53, %60, %61 : vector<8x128xi1>, vector<8x128xf32>
    %cst_38 = arith.constant dense<0.000000e+00> : vector<8xf32>
    %63 = vector.multi_reduction <add>, %62, %cst_38 [1] : vector<8x128xf32> to vector<8xf32>
    %64 = vector.shape_cast %63 : vector<8xf32> to vector<8x1xf32>
    %65 = tpu.reciprocal %64 {approx = true} : vector<8x1xf32> -> vector<8x1xf32>
    %66 = vector.broadcast %65 : vector<8x1xf32> to vector<8x128xf32>
    %67 = arith.mulf %62, %66 : vector<8x128xf32>
    %c0_39 = arith.constant 0 : index
    %c0_40 = arith.constant 0 : index
    %68 = vector.load %arg15[%c0_39, %c0_40] : memref<8x128xf32, #tpu.memory_space<vmem>>, vector<8x128xf32>
    tpu.vector_store %arg15[%c0_39, %c0_40], %67 {strides = array<i32>} : memref<8x128xf32, #tpu.memory_space<vmem>>, vector<8x128xf32>,
    return
  }
  func.func @transform_0(%arg0: i32) -> (i32, i32) {
    %c0_i32 = arith.constant 0 : i32
    %c0_i32_0 = arith.constant 0 : i32
    return %arg0, %c0_i32 : i32, i32
  }
  func.func @transform_1(%arg0: i32) -> (i32, i32) {
    %c0_i32 = arith.constant 0 : i32
    %c0_i32_0 = arith.constant 0 : i32
    %c0_i32_1 = arith.constant 0 : i32
    return %c0_i32, %c0_i32_0 : i32, i32
  }
  func.func @transform_2(%arg0: i32) -> (i32, i32) {
    %c0_i32 = arith.constant 0 : i32
    %c0_i32_0 = arith.constant 0 : i32
    %c0_i32_1 = arith.constant 0 : i32
    return %c0_i32, %c0_i32_0 : i32, i32
  }
  func.func @transform_3(%arg0: i32) -> (i32, i32) {
    %c0_i32 = arith.constant 0 : i32
    %c0_i32_0 = arith.constant 0 : i32
    %c0_i32_1 = arith.constant 0 : i32
    return %c0_i32, %c0_i32_0 : i32, i32
  }
  func.func @transform_4(%arg0: i32) -> (i32, i32) {
    %c0_i32 = arith.constant 0 : i32
    %c0_i32_0 = arith.constant 0 : i32
    %c0_i32_1 = arith.constant 0 : i32
    return %c0_i32, %c0_i32_0 : i32, i32
  }
  func.func @transform_5(%arg0: i32) -> (i32, i32) {
    %c0_i32 = arith.constant 0 : i32
    %c0_i32_0 = arith.constant 0 : i32
    %c0_i32_1 = arith.constant 0 : i32
    return %c0_i32, %c0_i32_0 : i32, i32
  }
  func.func @transform_6(%arg0: i32) -> (i32, i32) {
    %c0_i32 = arith.constant 0 : i32
    %c0_i32_0 = arith.constant 0 : i32
    %c0_i32_1 = arith.constant 0 : i32
    return %c0_i32, %c0_i32_0 : i32, i32
  }
  func.func @transform_7(%arg0: i32) -> (i32, i32) {
    %c0_i32 = arith.constant 0 : i32
    %c0_i32_0 = arith.constant 0 : i32
    %c0_i32_1 = arith.constant 0 : i32
    return %c0_i32, %c0_i32_0 : i32, i32
  }
  func.func @transform_8(%arg0: i32) -> (i32, i32) {
    %c0_i32 = arith.constant 0 : i32
    %c0_i32_0 = arith.constant 0 : i32
    %c0_i32_1 = arith.constant 0 : i32
    return %c0_i32, %c0_i32_0 : i32, i32
  }
  func.func @transform_9(%arg0: i32) -> (i32, i32) {
    %c0_i32 = arith.constant 0 : i32
    %c0_i32_0 = arith.constant 0 : i32
    %c0_i32_1 = arith.constant 0 : i32
    return %c0_i32, %c0_i32_0 : i32, i32
  }
  func.func @transform_10(%arg0: i32) -> (i32, i32) {
    %c0_i32 = arith.constant 0 : i32
    %c0_i32_0 = arith.constant 0 : i32
    %c0_i32_1 = arith.constant 0 : i32
    return %c0_i32, %c0_i32_0 : i32, i32
  }
  func.func @transform_11(%arg0: i32) -> (i32, i32) {
    %c0_i32 = arith.constant 0 : i32
    %c0_i32_0 = arith.constant 0 : i32
    %c0_i32_1 = arith.constant 0 : i32
    return %c0_i32, %c0_i32_0 : i32, i32
  }
  func.func @transform_12(%arg0: i32) -> (i32, i32) {
    %c0_i32 = arith.constant 0 : i32
    %c0_i32_0 = arith.constant 0 : i32
    %c0_i32_1 = arith.constant 0 : i32
    return %c0_i32, %c0_i32_0 : i32, i32
  }
  func.func @transform_13(%arg0: i32) -> (i32, i32) {
    %c0_i32 = arith.constant 0 : i32
    %c0_i32_0 = arith.constant 0 : i32
    %c0_i32_1 = arith.constant 0 : i32
    return %c0_i32, %c0_i32_0 : i32, i32
  }
  func.func @transform_14(%arg0: i32) -> (i32, i32) {
    %c0_i32 = arith.constant 0 : i32
    %c0_i32_0 = arith.constant 0 : i32
    return %arg0, %c0_i32 : i32, i32
  }
}

</mosaic_0001>

<bundles_post_ra>
// kernel: tpu_custom_call.1
= control target key start
LH: loop header
LB: loop body
LE: loop exit
PB: predicated region body
PF: predicated region fallthrough
CT: control target
= control target key end

     0   :  { %19 = vsyncpa [#allocation3], 0  ;;  %s1227_s0 = inlined_call_operand.hbm [shape: bf16[8,32], index: 0, kind: input, shape index: {}]   ;;  %s1228_s1 = inlined_call_operand.hbm [shape: bf16[32,128], index: 1, kind: input, shape index: {}]   ;;  %s1229_s2 = inlined_call_operand.vmem [shape: f32[1,128], index: 2, kind: input, shape index: {}]   ;;  %s1230_s3 = inlined_call_operand.hbm [shape: bf16[128,128], index: 3, kind: input, shape index: {}]   ;;  %s1231_s4 = inlined_call_operand.vmem [shape: f32[1,128], index: 4, kind: input, shape index: {}]   ;;  %s1232_s5 = inlined_call_operand.hbm [shape: bf16[128,128], index: 5, kind: input, shape index: {}]   ;;  %s1233_s6 = inlined_call_operand.vmem [shape: f32[1,128], index: 6, kind: input, shape index: {}]   ;;  %s1234_s7 = inlined_call_operand.hbm [shape: bf16[128,128], index: 7, kind: input, shape index: {}]   ;;  %s1235_s8 = inlined_call_operand.vmem [shape: f32[1,128], index: 8, kind: input, shape index: {}]   ;;  %s1236_s9 = inlined_call_operand.hbm [shape: bf16[128,128], index: 9, kind: input, shape index: {}]   ;;  %s1237_s10 = inlined_call_operand.vmem [shape: f32[1,128], index: 10, kind: input, shape index: {}]   ;;  %s1238_s11 = inlined_call_operand.hbm [shape: bf16[128,128], index: 11, kind: input, shape index: {}]   ;;  %s1239_s12 = inlined_call_operand.vmem [shape: f32[1,128], index: 12, kind: input, shape index: {}]   ;;  %s1240_s13 = inlined_call_operand.vmem [shape: f32[1,128], index: 13, kind: input, shape index: {}]   ;;  %s1241_s14 = inlined_call_operand.hbm [shape: f32[8,128], index: 14, kind: output, shape index: {}]  }
   0x1   :  { %20 = vsyncpa [#allocation6], 0 }
   0x2   :  { %21 = vsyncpa [#allocation9], 0 }
   0x3   :  { %22 = vsyncpa [#allocation12], 0  ;;  %s39_s15 = sshll.u32 %s1228_s1, 4  ;;  %s40_s15 = int_to_ptr.hbm [resolvable:$true] %s39_s15 }
   0x4   :  { %23 = vsyncpa [#allocation4], 0  ;;  %s1082_s16 = smov [#allocation5]   ;;  %s69_s13 = sshll.u32 %s1232_s5, 4  ;;  %s70_s13 = int_to_ptr.hbm [resolvable:$true] %s69_s13 }
   0x5   :  { %s41_s17 = sshll.u32 %s1082_s16, 4  ;;  %s1083_s20 = smov 64   ;;  %s42_s17 = int_to_ptr.vmem [resolvable:$true] %s41_s17 }
   0x6   :  { %s1084_s21 = smov 4   ;;  %s1085_s22 = smov [#allocation8]  }
   0x7   :  { %47 = dma.hbm_to_vmem [thread:$0]  %s40_s15, 256, %s42_s17, [#allocation6], %s1083_s20, %s1083_s20, %s1084_s21  }
   0x8   :  { %s71_s23 = sshll.u32 %s1085_s22, 4  ;;  %s99_s25 = sshll.u32 %s1236_s9, 4  ;;  %s72_s23 = int_to_ptr.vmem [resolvable:$true] %s71_s23  ;;  %s100_s25 = int_to_ptr.hbm [resolvable:$true] %s99_s25 }
   0x9   :  { %77 = dma.hbm_to_vmem [thread:$0]  %s70_s13, 1024, %s72_s23, [#allocation9], %s1083_s20, %s1083_s20, %s1084_s21  }
   0xa   :  { %s29_s27 = sshll.u32 %s1227_s0, 4  ;;  %s1086_s28 = smov [#allocation11]   ;;  %s30_s27 = int_to_ptr.hbm [resolvable:$true] %s29_s27 }
   0xb   :  { %s101_s29 = sshll.u32 %s1086_s28, 4  ;;  %s1087_s30 = smov [#allocation2]   ;;  %s102_s29 = int_to_ptr.vmem [resolvable:$true] %s101_s29 }
   0xc   :  { %107 = dma.hbm_to_vmem [thread:$0]  %s100_s25, 1024, %s102_s29, [#allocation12], %s1083_s20, %s1083_s20, %s1084_s21  }
   0xd   :  { %s31_s9 = sshll.u32 %s1087_s30, 4  ;;  %s54_s17 = sshll.u32 %s1230_s3, 4  ;;  %s32_s9 = int_to_ptr.vmem [resolvable:$true] %s31_s9  ;;  %s55_s17 = int_to_ptr.hbm [resolvable:$true] %s54_s17 }
   0xe   :  { %34 = dma.hbm_to_vmem [thread:$0]  %s30_s27, 64, %s32_s9, [#allocation3]  }
   0xf   :  { %s84_s0 = sshll.u32 %s1234_s7, 4  ;;  %s1088_s13 = smov [#allocation7]   ;;  %s85_s0 = int_to_ptr.hbm [resolvable:$true] %s84_s0 }
  0x10   :  { %s56_s22 = sshll.u32 %s1088_s13, 4  ;;  %s1089_s23 = smov [#allocation10]   ;;  %s57_s22 = int_to_ptr.vmem [resolvable:$true] %s56_s22 }
  0x11   :  { %62 = dma.hbm_to_vmem [thread:$0]  %s55_s17, 1024, %s57_s22, [#allocation6], %s1083_s20, %s1083_s20, %s1084_s21  }
  0x12   :  { %s86_s24 = sshll.u32 %s1089_s23, 4  ;;  %s114_s3 = sshll.u32 %s1238_s11, 4  ;;  %s87_s24 = int_to_ptr.vmem [resolvable:$true] %s86_s24  ;;  %s115_s3 = int_to_ptr.hbm [resolvable:$true] %s114_s3 }
  0x13   :  { %92 = dma.hbm_to_vmem [thread:$0]  %s85_s0, 1024, %s87_s24, [#allocation9], %s1083_s20, %s1083_s20, %s1084_s21  }
  0x14   :  { %s1090_s7 = smov [#allocation13]  }
  0x15   :  { %s116_s5 = sshll.u32 %s1090_s7, 4  ;;  %s117_s5 = int_to_ptr.vmem [resolvable:$true] %s116_s5 }
  0x16   :  { %122 = dma.hbm_to_vmem [thread:$0]  %s115_s3, 1024, %s117_s5, [#allocation12], %s1083_s20, %s1083_s20, %s1084_s21  }
  0x17   :  { %1072 = dma.done.wait [#allocation3], 64  }
  0x18   :  { %1073 = vsyncadd [#allocation3], 4294967232 }
  0x19   :  { %1074 = dma.done.wait [#allocation6], 1280  }
  0x1a   :  { %1075 = vsyncadd [#allocation6], 4294966016 }
  0x1b   :  { %1076 = dma.done.wait [#allocation9], 2048  }
  0x1c   :  { %1077 = vsyncadd [#allocation9], 4294965248 }
  0x1d   :  { %1078 = dma.done.wait [#allocation12], 2048  }
  0x1e   :  { %1079 = vsyncadd [#allocation12], 4294965248  ;;  %v819_v0 = vld [vmem:[#allocation5 + $0x8] sm:$0xff]  ;;  %v818_v2 = vld [vmem:[#allocation5] sm:$0xff]  ;;  %vm177_vm0 = vcmask 261120  }
  0x1f   :  { %v827_v1 = vld [vmem:[#allocation7 + $0x38] sm:$0xff]  ;;  %187 = vmatpush.bf16.msra.mxu0 %v819_v0  ;;  %v826_v3 = vld [vmem:[#allocation7 + $0x30] sm:$0xff]  ;;  %v156_v4 = vld [vmem:[#allocation2] sm:$0xf] }
  0x20   :  { %265 = vmatpush.bf16.msra.mxu1 %v827_v1  ;;  %v825_v5 = vld [vmem:[#allocation7 + $0x28] sm:$0xff]  ;;  %v824_v6 = vld [vmem:[#allocation7 + $0x20] sm:$0xff]  ;;  %v823_v7 = vld [vmem:[#allocation7 + $0x18] sm:$0xff] }
  0x21   :  { %v822_v8 = vld [vmem:[#allocation7 + $0x10] sm:$0xff]  ;;  %v821_v9 = vld [vmem:[#allocation7 + $0x8] sm:$0xff]  ;;  %v820_v10 = vld [vmem:[#allocation7] sm:$0xff] }
  0x22   :  { %v835_v11 = vld [vmem:[#allocation8 + $0x38] sm:$0xff]  ;;  %v834_v12 = vld [vmem:[#allocation8 + $0x30] sm:$0xff]  ;;  %v833_v13 = vld [vmem:[#allocation8 + $0x28] sm:$0xff] }
  0x23   :  { %188 = vmatpush.bf16.msra.mxu0 %v818_v2  ;;  %349 = vmatpush.bf16.msra.mxu2 %v835_v11  ;;  %v832_v14 = vld [vmem:[#allocation8 + $0x20] sm:$0xff]  ;;  %v831_v15 = vld [vmem:[#allocation8 + $0x18] sm:$0xff]  ;;  %v830_v16 = vld [vmem:[#allocation8 + $0x10] sm:$0xff] }
  0x24   :  { %266 = vmatpush.bf16.msra.mxu1 %v826_v3  ;;  %v870_v17 = vld [vmem:[%s1229_s2] ss:$0 sm:$0xff]  ;;  %v828_v25 = vld [vmem:[#allocation8] sm:$0xff]  ;;  %v843_v26 = vld [vmem:[#allocation10 + $0x38] sm:$0xff] }
  0x25   :  { %v829_v24 = vld [vmem:[#allocation8 + $0x8] sm:$0xff]  ;;  %433 = vmatpush.bf16.msra.mxu3 %v843_v26  ;;  %v842_v27 = vld [vmem:[#allocation10 + $0x30] sm:$0xff]  ;;  %v840_v29 = vld [vmem:[#allocation10 + $0x20] sm:$0xff] }
  0x26   :  { %657 = vmatmul.msk.bf16.vlgmr.msra.gmra.mxu0 %vm177_vm0, %v156_v4  ;;  %v841_v28 = vld [vmem:[#allocation10 + $0x28] sm:$0xff]  ;;  %v839_v30 = vld [vmem:[#allocation10 + $0x18] sm:$0xff]  ;;  %v838_v31 = vld [vmem:[#allocation10 + $0x10] sm:$0xff] }
  0x27   :  { %350 = vmatpush.bf16.msra.mxu2 %v834_v12  ;;  %v871_v32 = vld [vmem:[%s1231_s4] ss:$0 sm:$0xff]  ;;  %v836_v40 = vld [vmem:[#allocation10] sm:$0xff]  ;;  %v851_v41 = vld [vmem:[#allocation11 + $0x38] sm:$0xff] }
  0x28   :  { %267 = vmatpush.bf16.msra.mxu1 %v825_v5  ;;  %v837_v39 = vld [vmem:[#allocation10 + $0x8] sm:$0xff]  ;;  %517 = vmatpush.bf16.msrb.mxu0 %v851_v41  ;;  %v850_v42 = vld [vmem:[#allocation11 + $0x30] sm:$0xff]  ;;  %v848_v44 = vld [vmem:[#allocation11 + $0x20] sm:$0xff] }
  0x29   :  { %434 = vmatpush.bf16.msra.mxu3 %v842_v27  ;;  %v849_v43 = vld [vmem:[#allocation11 + $0x28] sm:$0xff]  ;;  %v847_v45 = vld [vmem:[#allocation11 + $0x18] sm:$0xff]  ;;  %v846_v46 = vld [vmem:[#allocation11 + $0x10] sm:$0xff] }
  0x2a   :  { %v872_v47 = vld [vmem:[%s1233_s6] ss:$0 sm:$0xff]  ;;  %v844_v55 = vld [vmem:[#allocation11] sm:$0xff]  ;;  %v859_v56 = vld [vmem:[#allocation13 + $0x38] sm:$0xff] }
  0x2b   :  { %351 = vmatpush.bf16.msra.mxu2 %v833_v13  ;;  %v845_v54 = vld [vmem:[#allocation11 + $0x8] sm:$0xff]  ;;  %v858_v57 = vld [vmem:[#allocation13 + $0x30] sm:$0xff]  ;;  %v856_v59 = vld [vmem:[#allocation13 + $0x20] sm:$0xff] }
  0x2c   :  { %268 = vmatpush.bf16.msra.mxu1 %v824_v6  ;;  %518 = vmatpush.bf16.msrb.mxu0 %v850_v42  ;;  %v857_v58 = vld [vmem:[#allocation13 + $0x28] sm:$0xff]  ;;  %v855_v60 = vld [vmem:[#allocation13 + $0x18] sm:$0xff]  ;;  %v854_v61 = vld [vmem:[#allocation13 + $0x10] sm:$0xff] }
  0x2d   :  { %435 = vmatpush.bf16.msra.mxu3 %v841_v28  ;;  %v873_v62 = vld [vmem:[%s1235_s8] ss:$0 sm:$0xff]  ;;  %v852_v6 = vld [vmem:[#allocation13] sm:$0xff] }
  0x2e   :  { %v853_v5 = vld [vmem:[#allocation13 + $0x8] sm:$0xff] }
  0x2f   :  { %352 = vmatpush.bf16.msra.mxu2 %v832_v14  ;;  %v614_v14 = vlaneseq }
  0x30   :  { %269 = vmatpush.bf16.msra.mxu1 %v823_v7  ;;  %519 = vmatpush.bf16.msrb.mxu0 %v849_v43  ;;  %v874_v7 = vld [vmem:[%s1237_s10] ss:$0 sm:$0xff]  ;;  %s1091_s10 = smov [#allocation14]  }
  0x31   :  { %436 = vmatpush.bf16.msra.mxu3 %v840_v29  ;;  %s634_s9 = sshll.u32 %s1091_s10, 4  ;;  %s635_s9 = int_to_ptr.vmem [resolvable:$true] %s634_s9 }
  0x33   :  { %353 = vmatpush.bf16.msra.mxu2 %v831_v15  ;;  %v615_v15 = vand.u32 127, %v614_v14 }
  0x34   :  { %270 = vmatpush.bf16.msra.mxu1 %v822_v8  ;;  %520 = vmatpush.bf16.msrb.mxu0 %v848_v44 }
  0x35   :  { %437 = vmatpush.bf16.msra.mxu3 %v839_v30  ;;  %vm616_vm1 = vcmp.lt.s32.totalorder %v615_v15, 51 }
  0x37   :  { %354 = vmatpush.bf16.msra.mxu2 %v830_v16  ;;  %v875_v16 = vld [vmem:[%s1239_s12] ss:$0 sm:$0xff]  ;;  %s636_s12 = sshll.u32 %s1241_s14, 4  ;;  %s637_s12 = int_to_ptr.hbm [resolvable:$true] %s636_s12 }
  0x38   :  { %271 = vmatpush.bf16.msra.mxu1 %v821_v9  ;;  %521 = vmatpush.bf16.msrb.mxu0 %v847_v45 }
  0x39   :  { %438 = vmatpush.bf16.msra.mxu3 %v838_v31 }
  0x3b   :  { %355 = vmatpush.bf16.msra.mxu2 %v829_v24 }
  0x3c   :  { %272 = vmatpush.bf16.msra.mxu1 %v820_v10  ;;  %522 = vmatpush.bf16.msrb.mxu0 %v846_v46 }
  0x3d   :  { %439 = vmatpush.bf16.msra.mxu3 %v837_v39 }
  0x3f   :  { %356 = vmatpush.bf16.msra.mxu2 %v828_v25 }
  0x40   :  { %523 = vmatpush.bf16.msrb.mxu0 %v845_v54  ;;  %601 = vmatpush.bf16.msrb.mxu1 %v859_v56 }
  0x41   :  { %440 = vmatpush.bf16.msra.mxu3 %v836_v40 }
  0x44   :  { %524 = vmatpush.bf16.msrb.mxu0 %v844_v55  ;;  %602 = vmatpush.bf16.msrb.mxu1 %v858_v57 }
  0x48   :  { %603 = vmatpush.bf16.msrb.mxu1 %v857_v58 }
  0x4c   :  { %604 = vmatpush.bf16.msrb.mxu1 %v856_v59 }
  0x50   :  { %605 = vmatpush.bf16.msrb.mxu1 %v855_v60 }
  0x54   :  { %606 = vmatpush.bf16.msrb.mxu1 %v854_v61 }
  0x58   :  { %607 = vmatpush.bf16.msrb.mxu1 %v853_v5 }
  0x5c   :  { %608 = vmatpush.bf16.msrb.mxu1 %v852_v6 }
  0xa3   :  { %v190_v18 = vpop.f32.mrf.mxu0 }
  0xa4   :  { %v191_v19 = vadd.f32 %v870_v17, %v190_v18 }
  0xa6   :  { %v194_v20 = vmul.f32 0.01, %v191_v19 }
  0xa8   :  { %v195_v21 = vmax.f32 %v191_v19, %v194_v20 }
  0xaa   :  { %v196_v22 = vpack.c.bf16 %v195_v21, %v195_v21 }
  0xab   :  { %v192_v23 = vpop.f32.mrf.mxu0 }
  0xac   :  { %273 = vmatmul.bf16.vlgmr.msra.gmra.mxu1 %v196_v22 }
 0x129   :  { %v274_v33 = vpop.f32.mrf.mxu1 }
 0x12a   :  { %v275_v34 = vadd.f32 %v871_v32, %v274_v33 }
 0x12c   :  { %v278_v35 = vmul.f32 0.01, %v275_v34 }
 0x12e   :  { %v279_v36 = vmax.f32 %v275_v34, %v278_v35 }
 0x130   :  { %v280_v37 = vpack.c.bf16 %v279_v36, %v279_v36 }
 0x131   :  { %v276_v38 = vpop.f32.mrf.mxu1 }
 0x132   :  { %357 = vmatmul.bf16.vlgmr.msra.gmra.mxu2 %v280_v37 }
 0x1b5   :  { %v358_v48 = vpop.f32.mrf.mxu2 }
 0x1b6   :  { %v359_v49 = vadd.f32 %v872_v47, %v358_v48 }
 0x1b8   :  { %v362_v50 = vmul.f32 0.01, %v359_v49 }
 0x1ba   :  { %v363_v51 = vmax.f32 %v359_v49, %v362_v50 }
 0x1bc   :  { %v364_v52 = vpack.c.bf16 %v363_v51, %v363_v51 }
 0x1bd   :  { %v360_v53 = vpop.f32.mrf.mxu2 }
 0x1be   :  { %441 = vmatmul.bf16.vlgmr.msra.gmra.mxu3 %v364_v52 }
 0x241   :  { %v442_v63 = vpop.f32.mrf.mxu3 }
 0x242   :  { %v443_v0 = vadd.f32 %v873_v62, %v442_v63 }
 0x244   :  { %v446_v1 = vmul.f32 0.01, %v443_v0 }
 0x246   :  { %v447_v2 = vmax.f32 %v443_v0, %v446_v1 }
 0x248   :  { %v448_v3 = vpack.c.bf16 %v447_v2, %v447_v2 }
 0x249   :  { %v444_v4 = vpop.f32.mrf.mxu3 }
 0x24a   :  { %525 = vmatmul.bf16.vlgmr.msrb.gmra.mxu0 %v448_v3 }
 0x2c7   :  { %v526_v8 = vpop.f32.mrf.mxu0 }
 0x2c8   :  { %v527_v9 = vadd.f32 %v874_v7, %v526_v8 }
 0x2ca   :  { %v530_v10 = vmul.f32 0.01, %v527_v9 }
 0x2cc   :  { %v531_v11 = vmax.f32 %v527_v9, %v530_v10 }
 0x2ce   :  { %v532_v12 = vpack.c.bf16 %v531_v11, %v531_v11 }
 0x2cf   :  { %v528_v13 = vpop.f32.mrf.mxu0 }
 0x2d0   :  { %609 = vmatmul.bf16.vlgmr.msrb.gmra.mxu1 %v532_v12 }
 0x34d   :  { %v610_v17 = vpop.f32.mrf.mxu1 }
 0x34e   :  { %v611_v18 = vadd.f32 %v875_v16, %v610_v17 }
 0x350   :  { %v617_v19 = vsel %vm616_vm1, %v611_v18, -1e+30 }
 0x351   :  { %618 = vmax.xlane.f32.xlu0 %v617_v19 }
 0x355   :  { %v612_v20 = vpop.f32.mrf.mxu1 }
 0x3c4   :  { %v619_v21 = vpop.xlane.xlu0 %618 }
 0x3c5   :  { %v620_v22 = vsub.f32 %v617_v19, %v619_v21 }
 0x3c7   :  { %v621_v23 = vmul.f32 1.442695, %v620_v22 }
 0x3c9   :  { %876 = vpow2.f32 %v621_v23 }
 0x3cf   :  { %v877_v24 = vpop.eup %876 }
 0x3d0   :  { %v623_v25 = vsel %vm616_vm1, %v877_v24, 0.0 }
 0x3d1   :  { %624 = vadd.xlane.f32.xlu0 %v623_v25 }
 0x444   :  { %v625_v26 = vpop.xlane.xlu0 %624 }
 0x445   :  { %878 = vrcp.f32 %v625_v26 }
 0x44b   :  { %v879_v27 = vpop.eup %878 }
 0x44c   :  { %v627_v28 = vmul.f32 %v879_v27, %v623_v25 }
 0x44e   :  { %628 = vst [vmem:[#allocation14] sm:$0xff] %v627_v28 }
 0x44f   :  { %639 = dma.vmem_to_hbm [thread:$0]  %s635_s9, 128, %s637_s12, [#allocation4]  }
 0x450   :  { %1080 = dma.done.wait [#allocation4], 128  }
 0x451   :  { %1081 = vsyncadd [#allocation4], 4294967168 }
 0x452   :  { %644 = vsyncpa [#allocation3], 1 }
 0x453   :  { %645 = vsyncpa [#allocation6], 1 }
 0x454   :  { %646 = vsyncpa [#allocation9], 1 }
 0x455   :  { %647 = vsyncpa [#allocation12], 1 }
 0x456   :  { %648 = vsyncpa [#allocation4], 1 }

// kernel: tpu_custom_call.1
= control target key start
LH: loop header
LB: loop body
LE: loop exit
PB: predicated region body
PF: predicated region fallthrough
CT: control target
= control target key end

     0   :  { %19 = vsyncpa [#allocation3], 0  ;;  %s1227_s0 = inlined_call_operand.hbm [shape: bf16[8,32], index: 0, kind: input, shape index: {}]   ;;  %s1228_s1 = inlined_call_operand.hbm [shape: bf16[32,128], index: 1, kind: input, shape index: {}]   ;;  %s1229_s2 = inlined_call_operand.vmem [shape: f32[1,128], index: 2, kind: input, shape index: {}]   ;;  %s1230_s3 = inlined_call_operand.hbm [shape: bf16[128,128], index: 3, kind: input, shape index: {}]   ;;  %s1231_s4 = inlined_call_operand.vmem [shape: f32[1,128], index: 4, kind: input, shape index: {}]   ;;  %s1232_s5 = inlined_call_operand.hbm [shape: bf16[128,128], index: 5, kind: input, shape index: {}]   ;;  %s1233_s6 = inlined_call_operand.vmem [shape: f32[1,128], index: 6, kind: input, shape index: {}]   ;;  %s1234_s7 = inlined_call_operand.hbm [shape: bf16[128,128], index: 7, kind: input, shape index: {}]   ;;  %s1235_s8 = inlined_call_operand.vmem [shape: f32[1,128], index: 8, kind: input, shape index: {}]   ;;  %s1236_s9 = inlined_call_operand.hbm [shape: bf16[128,128], index: 9, kind: input, shape index: {}]   ;;  %s1237_s10 = inlined_call_operand.vmem [shape: f32[1,128], index: 10, kind: input, shape index: {}]   ;;  %s1238_s11 = inlined_call_operand.hbm [shape: bf16[128,128], index: 11, kind: input, shape index: {}]   ;;  %s1239_s12 = inlined_call_operand.vmem [shape: f32[1,128], index: 12, kind: input, shape index: {}]   ;;  %s1240_s13 = inlined_call_operand.vmem [shape: f32[1,128], index: 13, kind: input, shape index: {}]   ;;  %s1241_s14 = inlined_call_operand.hbm [shape: f32[8,128], index: 14, kind: output, shape index: {}]  }
   0x1   :  { %20 = vsyncpa [#allocation6], 0 }
   0x2   :  { %21 = vsyncpa [#allocation9], 0 }
   0x3   :  { %22 = vsyncpa [#allocation12], 0  ;;  %s39_s15 = sshll.u32 %s1228_s1, 4  ;;  %s40_s15 = int_to_ptr.hbm [resolvable:$true] %s39_s15 }
   0x4   :  { %23 = vsyncpa [#allocation4], 0  ;;  %s1082_s16 = smov [#allocation5]   ;;  %s69_s13 = sshll.u32 %s1232_s5, 4  ;;  %s70_s13 = int_to_ptr.hbm [resolvable:$true] %s69_s13 }
   0x5   :  { %s41_s17 = sshll.u32 %s1082_s16, 4  ;;  %s1083_s20 = smov 64   ;;  %s42_s17 = int_to_ptr.vmem [resolvable:$true] %s41_s17 }
   0x6   :  { %s1084_s21 = smov 4   ;;  %s1085_s22 = smov [#allocation8]  }
   0x7   :  { %47 = dma.hbm_to_vmem [thread:$0]  %s40_s15, 256, %s42_s17, [#allocation6], %s1083_s20, %s1083_s20, %s1084_s21  }
   0x8   :  { %s71_s23 = sshll.u32 %s1085_s22, 4  ;;  %s99_s25 = sshll.u32 %s1236_s9, 4  ;;  %s72_s23 = int_to_ptr.vmem [resolvable:$true] %s71_s23  ;;  %s100_s25 = int_to_ptr.hbm [resolvable:$true] %s99_s25 }
   0x9   :  { %77 = dma.hbm_to_vmem [thread:$0]  %s70_s13, 1024, %s72_s23, [#allocation9], %s1083_s20, %s1083_s20, %s1084_s21  }
   0xa   :  { %s29_s27 = sshll.u32 %s1227_s0, 4  ;;  %s1086_s28 = smov [#allocation11]   ;;  %s30_s27 = int_to_ptr.hbm [resolvable:$true] %s29_s27 }
   0xb   :  { %s101_s29 = sshll.u32 %s1086_s28, 4  ;;  %s1087_s30 = smov [#allocation2]   ;;  %s102_s29 = int_to_ptr.vmem [resolvable:$true] %s101_s29 }
   0xc   :  { %107 = dma.hbm_to_vmem [thread:$0]  %s100_s25, 1024, %s102_s29, [#allocation12], %s1083_s20, %s1083_s20, %s1084_s21  }
   0xd   :  { %s31_s9 = sshll.u32 %s1087_s30, 4  ;;  %s54_s17 = sshll.u32 %s1230_s3, 4  ;;  %s32_s9 = int_to_ptr.vmem [resolvable:$true] %s31_s9  ;;  %s55_s17 = int_to_ptr.hbm [resolvable:$true] %s54_s17 }
   0xe   :  { %34 = dma.hbm_to_vmem [thread:$0]  %s30_s27, 64, %s32_s9, [#allocation3]  }
   0xf   :  { %s84_s0 = sshll.u32 %s1234_s7, 4  ;;  %s1088_s13 = smov [#allocation7]   ;;  %s85_s0 = int_to_ptr.hbm [resolvable:$true] %s84_s0 }
  0x10   :  { %s56_s22 = sshll.u32 %s1088_s13, 4  ;;  %s1089_s23 = smov [#allocation10]   ;;  %s57_s22 = int_to_ptr.vmem [resolvable:$true] %s56_s22 }
  0x11   :  { %62 = dma.hbm_to_vmem [thread:$0]  %s55_s17, 1024, %s57_s22, [#allocation6], %s1083_s20, %s1083_s20, %s1084_s21  }
  0x12   :  { %s86_s24 = sshll.u32 %s1089_s23, 4  ;;  %s114_s3 = sshll.u32 %s1238_s11, 4  ;;  %s87_s24 = int_to_ptr.vmem [resolvable:$true] %s86_s24  ;;  %s115_s3 = int_to_ptr.hbm [resolvable:$true] %s114_s3 }
  0x13   :  { %92 = dma.hbm_to_vmem [thread:$0]  %s85_s0, 1024, %s87_s24, [#allocation9], %s1083_s20, %s1083_s20, %s1084_s21  }
  0x14   :  { %s1090_s7 = smov [#allocation13]  }
  0x15   :  { %s116_s5 = sshll.u32 %s1090_s7, 4  ;;  %s117_s5 = int_to_ptr.vmem [resolvable:$true] %s116_s5 }
  0x16   :  { %122 = dma.hbm_to_vmem [thread:$0]  %s115_s3, 1024, %s117_s5, [#allocation12], %s1083_s20, %s1083_s20, %s1084_s21  }
  0x17   :  { %1072 = dma.done.wait [#allocation3], 64  }
  0x18   :  { %1073 = vsyncadd [#allocation3], 4294967232 }
  0x19   :  { %1074 = dma.done.wait [#allocation6], 1280  }
  0x1a   :  { %1075 = vsyncadd [#allocation6], 4294966016 }
  0x1b   :  { %1076 = dma.done.wait [#allocation9], 2048  }
  0x1c   :  { %1077 = vsyncadd [#allocation9], 4294965248 }
  0x1d   :  { %1078 = dma.done.wait [#allocation12], 2048  }
  0x1e   :  { %1079 = vsyncadd [#allocation12], 4294965248  ;;  %v819_v0 = vld [vmem:[#allocation5 + $0x8] sm:$0xff]  ;;  %v818_v2 = vld [vmem:[#allocation5] sm:$0xff]  ;;  %vm177_vm0 = vcmask 261120  }
  0x1f   :  { %v827_v1 = vld [vmem:[#allocation7 + $0x38] sm:$0xff]  ;;  %187 = vmatpush.bf16.msra.mxu0 %v819_v0  ;;  %v826_v3 = vld [vmem:[#allocation7 + $0x30] sm:$0xff]  ;;  %v156_v4 = vld [vmem:[#allocation2] sm:$0xf] }
  0x20   :  { %265 = vmatpush.bf16.msra.mxu1 %v827_v1  ;;  %v825_v5 = vld [vmem:[#allocation7 + $0x28] sm:$0xff]  ;;  %v824_v6 = vld [vmem:[#allocation7 + $0x20] sm:$0xff]  ;;  %v823_v7 = vld [vmem:[#allocation7 + $0x18] sm:$0xff] }
  0x21   :  { %v822_v8 = vld [vmem:[#allocation7 + $0x10] sm:$0xff]  ;;  %v821_v9 = vld [vmem:[#allocation7 + $0x8] sm:$0xff]  ;;  %v820_v10 = vld [vmem:[#allocation7] sm:$0xff] }
  0x22   :  { %v835_v11 = vld [vmem:[#allocation8 + $0x38] sm:$0xff]  ;;  %v834_v12 = vld [vmem:[#allocation8 + $0x30] sm:$0xff]  ;;  %v833_v13 = vld [vmem:[#allocation8 + $0x28] sm:$0xff] }
  0x23   :  { %188 = vmatpush.bf16.msra.mxu0 %v818_v2  ;;  %349 = vmatpush.bf16.msra.mxu2 %v835_v11  ;;  %v832_v14 = vld [vmem:[#allocation8 + $0x20] sm:$0xff]  ;;  %v831_v15 = vld [vmem:[#allocation8 + $0x18] sm:$0xff]  ;;  %v830_v16 = vld [vmem:[#allocation8 + $0x10] sm:$0xff] }
  0x24   :  { %266 = vmatpush.bf16.msra.mxu1 %v826_v3  ;;  %v870_v17 = vld [vmem:[%s1229_s2] ss:$0 sm:$0xff]  ;;  %v828_v25 = vld [vmem:[#allocation8] sm:$0xff]  ;;  %v843_v26 = vld [vmem:[#allocation10 + $0x38] sm:$0xff] }
  0x25   :  { %v829_v24 = vld [vmem:[#allocation8 + $0x8] sm:$0xff]  ;;  %433 = vmatpush.bf16.msra.mxu3 %v843_v26  ;;  %v842_v27 = vld [vmem:[#allocation10 + $0x30] sm:$0xff]  ;;  %v840_v29 = vld [vmem:[#allocation10 + $0x20] sm:$0xff] }
  0x26   :  { %657 = vmatmul.msk.bf16.vlgmr.msra.gmra.mxu0 %vm177_vm0, %v156_v4  ;;  %v841_v28 = vld [vmem:[#allocation10 + $0x28] sm:$0xff]  ;;  %v839_v30 = vld [vmem:[#allocation10 + $0x18] sm:$0xff]  ;;  %v838_v31 = vld [vmem:[#allocation10 + $0x10] sm:$0xff] }
  0x27   :  { %350 = vmatpush.bf16.msra.mxu2 %v834_v12  ;;  %v871_v32 = vld [vmem:[%s1231_s4] ss:$0 sm:$0xff]  ;;  %v836_v40 = vld [vmem:[#allocation10] sm:$0xff]  ;;  %v851_v41 = vld [vmem:[#allocation11 + $0x38] sm:$0xff] }
  0x28   :  { %267 = vmatpush.bf16.msra.mxu1 %v825_v5  ;;  %v837_v39 = vld [vmem:[#allocation10 + $0x8] sm:$0xff]  ;;  %517 = vmatpush.bf16.msrb.mxu0 %v851_v41  ;;  %v850_v42 = vld [vmem:[#allocation11 + $0x30] sm:$0xff]  ;;  %v848_v44 = vld [vmem:[#allocation11 + $0x20] sm:$0xff] }
  0x29   :  { %434 = vmatpush.bf16.msra.mxu3 %v842_v27  ;;  %v849_v43 = vld [vmem:[#allocation11 + $0x28] sm:$0xff]  ;;  %v847_v45 = vld [vmem:[#allocation11 + $0x18] sm:$0xff]  ;;  %v846_v46 = vld [vmem:[#allocation11 + $0x10] sm:$0xff] }
  0x2a   :  { %v872_v47 = vld [vmem:[%s1233_s6] ss:$0 sm:$0xff]  ;;  %v844_v55 = vld [vmem:[#allocation11] sm:$0xff]  ;;  %v859_v56 = vld [vmem:[#allocation13 + $0x38] sm:$0xff] }
  0x2b   :  { %351 = vmatpush.bf16.msra.mxu2 %v833_v13  ;;  %v845_v54 = vld [vmem:[#allocation11 + $0x8] sm:$0xff]  ;;  %v858_v57 = vld [vmem:[#allocation13 + $0x30] sm:$0xff]  ;;  %v856_v59 = vld [vmem:[#allocation13 + $0x20] sm:$0xff] }
  0x2c   :  { %268 = vmatpush.bf16.msra.mxu1 %v824_v6  ;;  %518 = vmatpush.bf16.msrb.mxu0 %v850_v42  ;;  %v857_v58 = vld [vmem:[#allocation13 + $0x28] sm:$0xff]  ;;  %v855_v60 = vld [vmem:[#allocation13 + $0x18] sm:$0xff]  ;;  %v854_v61 = vld [vmem:[#allocation13 + $0x10] sm:$0xff] }
  0x2d   :  { %435 = vmatpush.bf16.msra.mxu3 %v841_v28  ;;  %v873_v62 = vld [vmem:[%s1235_s8] ss:$0 sm:$0xff]  ;;  %v852_v6 = vld [vmem:[#allocation13] sm:$0xff] }
  0x2e   :  { %v853_v5 = vld [vmem:[#allocation13 + $0x8] sm:$0xff] }
  0x2f   :  { %352 = vmatpush.bf16.msra.mxu2 %v832_v14  ;;  %v614_v14 = vlaneseq }
  0x30   :  { %269 = vmatpush.bf16.msra.mxu1 %v823_v7  ;;  %519 = vmatpush.bf16.msrb.mxu0 %v849_v43  ;;  %v874_v7 = vld [vmem:[%s1237_s10] ss:$0 sm:$0xff]  ;;  %s1091_s10 = smov [#allocation14]  }
  0x31   :  { %436 = vmatpush.bf16.msra.mxu3 %v840_v29  ;;  %s634_s9 = sshll.u32 %s1091_s10, 4  ;;  %s635_s9 = int_to_ptr.vmem [resolvable:$true] %s634_s9 }
  0x33   :  { %353 = vmatpush.bf16.msra.mxu2 %v831_v15  ;;  %v615_v15 = vand.u32 127, %v614_v14 }
  0x34   :  { %270 = vmatpush.bf16.msra.mxu1 %v822_v8  ;;  %520 = vmatpush.bf16.msrb.mxu0 %v848_v44 }
  0x35   :  { %437 = vmatpush.bf16.msra.mxu3 %v839_v30  ;;  %vm616_vm1 = vcmp.lt.s32.totalorder %v615_v15, 51 }
  0x37   :  { %354 = vmatpush.bf16.msra.mxu2 %v830_v16  ;;  %v875_v16 = vld [vmem:[%s1239_s12] ss:$0 sm:$0xff]  ;;  %s636_s12 = sshll.u32 %s1241_s14, 4  ;;  %s637_s12 = int_to_ptr.hbm [resolvable:$true] %s636_s12 }
  0x38   :  { %271 = vmatpush.bf16.msra.mxu1 %v821_v9  ;;  %521 = vmatpush.bf16.msrb.mxu0 %v847_v45 }
  0x39   :  { %438 = vmatpush.bf16.msra.mxu3 %v838_v31 }
  0x3b   :  { %355 = vmatpush.bf16.msra.mxu2 %v829_v24 }
  0x3c   :  { %272 = vmatpush.bf16.msra.mxu1 %v820_v10  ;;  %522 = vmatpush.bf16.msrb.mxu0 %v846_v46 }
  0x3d   :  { %439 = vmatpush.bf16.msra.mxu3 %v837_v39 }
  0x3f   :  { %356 = vmatpush.bf16.msra.mxu2 %v828_v25 }
  0x40   :  { %523 = vmatpush.bf16.msrb.mxu0 %v845_v54  ;;  %601 = vmatpush.bf16.msrb.mxu1 %v859_v56 }
  0x41   :  { %440 = vmatpush.bf16.msra.mxu3 %v836_v40 }
  0x44   :  { %524 = vmatpush.bf16.msrb.mxu0 %v844_v55  ;;  %602 = vmatpush.bf16.msrb.mxu1 %v858_v57 }
  0x48   :  { %603 = vmatpush.bf16.msrb.mxu1 %v857_v58 }
  0x4c   :  { %604 = vmatpush.bf16.msrb.mxu1 %v856_v59 }
  0x50   :  { %605 = vmatpush.bf16.msrb.mxu1 %v855_v60 }
  0x54   :  { %606 = vmatpush.bf16.msrb.mxu1 %v854_v61 }
  0x58   :  { %607 = vmatpush.bf16.msrb.mxu1 %v853_v5 }
  0x5c   :  { %608 = vmatpush.bf16.msrb.mxu1 %v852_v6 }
  0xa3   :  { %v190_v18 = vpop.f32.mrf.mxu0 }
  0xa4   :  { %v191_v19 = vadd.f32 %v870_v17, %v190_v18 }
  0xa6   :  { %v194_v20 = vmul.f32 0.01, %v191_v19 }
  0xa8   :  { %v195_v21 = vmax.f32 %v191_v19, %v194_v20 }
  0xaa   :  { %v196_v22 = vpack.c.bf16 %v195_v21, %v195_v21 }
  0xab   :  { %v192_v23 = vpop.f32.mrf.mxu0 }
  0xac   :  { %273 = vmatmul.bf16.vlgmr.msra.gmra.mxu1 %v196_v22 }
 0x129   :  { %v274_v33 = vpop.f32.mrf.mxu1 }
 0x12a   :  { %v275_v34 = vadd.f32 %v871_v32, %v274_v33 }
 0x12c   :  { %v278_v35 = vmul.f32 0.01, %v275_v34 }
 0x12e   :  { %v279_v36 = vmax.f32 %v275_v34, %v278_v35 }
 0x130   :  { %v280_v37 = vpack.c.bf16 %v279_v36, %v279_v36 }
 0x131   :  { %v276_v38 = vpop.f32.mrf.mxu1 }
 0x132   :  { %357 = vmatmul.bf16.vlgmr.msra.gmra.mxu2 %v280_v37 }
 0x1b5   :  { %v358_v48 = vpop.f32.mrf.mxu2 }
 0x1b6   :  { %v359_v49 = vadd.f32 %v872_v47, %v358_v48 }
 0x1b8   :  { %v362_v50 = vmul.f32 0.01, %v359_v49 }
 0x1ba   :  { %v363_v51 = vmax.f32 %v359_v49, %v362_v50 }
 0x1bc   :  { %v364_v52 = vpack.c.bf16 %v363_v51, %v363_v51 }
 0x1bd   :  { %v360_v53 = vpop.f32.mrf.mxu2 }
 0x1be   :  { %441 = vmatmul.bf16.vlgmr.msra.gmra.mxu3 %v364_v52 }
 0x241   :  { %v442_v63 = vpop.f32.mrf.mxu3 }
 0x242   :  { %v443_v0 = vadd.f32 %v873_v62, %v442_v63 }
 0x244   :  { %v446_v1 = vmul.f32 0.01, %v443_v0 }
 0x246   :  { %v447_v2 = vmax.f32 %v443_v0, %v446_v1 }
 0x248   :  { %v448_v3 = vpack.c.bf16 %v447_v2, %v447_v2 }
 0x249   :  { %v444_v4 = vpop.f32.mrf.mxu3 }
 0x24a   :  { %525 = vmatmul.bf16.vlgmr.msrb.gmra.mxu0 %v448_v3 }
 0x2c7   :  { %v526_v8 = vpop.f32.mrf.mxu0 }
 0x2c8   :  { %v527_v9 = vadd.f32 %v874_v7, %v526_v8 }
 0x2ca   :  { %v530_v10 = vmul.f32 0.01, %v527_v9 }
 0x2cc   :  { %v531_v11 = vmax.f32 %v527_v9, %v530_v10 }
 0x2ce   :  { %v532_v12 = vpack.c.bf16 %v531_v11, %v531_v11 }
 0x2cf   :  { %v528_v13 = vpop.f32.mrf.mxu0 }
 0x2d0   :  { %609 = vmatmul.bf16.vlgmr.msrb.gmra.mxu1 %v532_v12 }
 0x34d   :  { %v610_v17 = vpop.f32.mrf.mxu1 }
 0x34e   :  { %v611_v18 = vadd.f32 %v875_v16, %v610_v17 }
 0x350   :  { %v617_v19 = vsel %vm616_vm1, %v611_v18, -1e+30 }
 0x351   :  { %618 = vmax.xlane.f32.xlu0 %v617_v19 }
 0x355   :  { %v612_v20 = vpop.f32.mrf.mxu1 }
 0x3c4   :  { %v619_v21 = vpop.xlane.xlu0 %618 }
 0x3c5   :  { %v620_v22 = vsub.f32 %v617_v19, %v619_v21 }
 0x3c7   :  { %v621_v23 = vmul.f32 1.442695, %v620_v22 }
 0x3c9   :  { %876 = vpow2.f32 %v621_v23 }
 0x3cf   :  { %v877_v24 = vpop.eup %876 }
 0x3d0   :  { %v623_v25 = vsel %vm616_vm1, %v877_v24, 0.0 }
 0x3d1   :  { %624 = vadd.xlane.f32.xlu0 %v623_v25 }
 0x444   :  { %v625_v26 = vpop.xlane.xlu0 %624 }
 0x445   :  { %878 = vrcp.f32 %v625_v26 }
 0x44b   :  { %v879_v27 = vpop.eup %878 }
 0x44c   :  { %v627_v28 = vmul.f32 %v879_v27, %v623_v25 }
 0x44e   :  { %628 = vst [vmem:[#allocation14] sm:$0xff] %v627_v28 }
 0x44f   :  { %639 = dma.vmem_to_hbm [thread:$0]  %s635_s9, 128, %s637_s12, [#allocation4]  }
 0x450   :  { %1080 = dma.done.wait [#allocation4], 128  }
 0x451   :  { %1081 = vsyncadd [#allocation4], 4294967168 }
 0x452   :  { %644 = vsyncpa [#allocation3], 1 }
 0x453   :  { %645 = vsyncpa [#allocation6], 1 }
 0x454   :  { %646 = vsyncpa [#allocation9], 1 }
 0x455   :  { %647 = vsyncpa [#allocation12], 1 }
 0x456   :  { %648 = vsyncpa [#allocation4], 1 }

</bundles_post_ra>
